<compile_context>
chip_gen: v7x
topology: tpu7x:2x2x1
jax: 0.10.0
libtpu: 0.0.40
codegen_flags: <defaults>
</compile_context>

<pallas_src>
import functools

import jax
import jax.numpy as jnp
from jax import lax
from jax.experimental import pallas as pl
from jax.experimental.pallas import tpu as pltpu

_NT = (((1,), (1,)), ((), ()))   # contract last axis of both operands (A @ B.T)


def _round_up(x, m):
    return ((x + m - 1) // m) * m


def _pick_tile(n_pad, batch, cap):
    """Largest multiple of 128 <= cap that divides n_pad; keep >=2 grid steps if batch==1."""
    best, t = 128, 128
    cap = max(128, min(cap, n_pad))
    while t <= cap:
        if n_pad % t == 0 and not (batch == 1 and t == n_pad and n_pad > 128):
            best = t
        t += 128
    return best


def _has_bf16_vpu():
    # v5e and older have no bf16 VPU/EUP path -> a bf16 GELU would only add converts.
    try:
        kind = jax.devices()[0].device_kind.lower()
    except Exception:
        return True
    return not any(v in kind for v in ("v2", "v3", "v4", "v5"))


def _weighted_out_kernel(coords_ref, feats_ref, sel_ref, asel_ref, csum_ref,
                         w1f_ref, w1n_ref, b1_ref, w2_ref, b2_ref, out_ref,
                         *, mxu_bf16, gelu_bf16):
    coords = coords_ref[0]                    # (tn, c*3)  natural layout, n on sublanes
    feats = feats_ref[0]                      # (tn, f)

    # ||coords|| per coord channel, lane-dense over n: sel[ci, 3*ci+d] = 1.
    norm = jnp.sqrt(lax.dot_general(sel_ref[...], coords * coords, _NT,
                                    preferred_element_type=jnp.float32))    # (c, tn)

    # FeedForward layer 1.  The feats part contracts the last axes (NT) so the natural
    # layout tile needs no transpose; the norm part carries the folded per-batch
    # (x - mean)/(std + eps) affine and stays f32 (tiny K, better numerics, same cost).
    f_in = feats.astype(jnp.bfloat16) if mxu_bf16 else feats
    h = (lax.dot_general(w1f_ref[...], f_in, _NT, preferred_element_type=jnp.float32)
         + jnp.dot(w1n_ref[0], norm, preferred_element_type=jnp.float32)
         + b1_ref[0])                                                       # (mid, tn)

    # NONLIN (assumed GELU, tanh approx).  bf16 on v6e/v7x halves the binding VPU slot.
    if mxu_bf16:
        if gelu_bf16:
            h = h.astype(jnp.bfloat16)
        h = jax.nn.gelu(h, approximate=True).astype(jnp.bfloat16)
    else:
        h = jax.nn.gelu(h, approximate=True)

    # FeedForward layer 2 with the (ci,o) -> (ci,o,d) row expansion folded into w2.
    w_exp = (jnp.dot(w2_ref[...], h, preferred_element_type=jnp.float32)
             + b2_ref[...])                                                 # (c*o*3, tn)

    # coords_exp[(ci,o,d), n] = coords[n, ci, d]: lane-dense gather via a 0/1 matmul,
    # re-read from the ref so the coords tile isn't held live across the FeedForward.
    coords_exp = lax.dot_general(asel_ref[...], coords_ref[0], _NT,
                                 preferred_element_type=jnp.float32)        # (c*o*3, tn)

    # transformed[(o,d), n] = sum_ci coords_exp * w_exp  (sum over ci as a 0/1 matmul,
    # so no sublane slicing / single-row broadcasts appear in the epilogue).
    out = jnp.dot(csum_ref[...], coords_exp * w_exp,
                  preferred_element_type=jnp.float32)                       # (o*3, tn)
    out_ref[0] = out.astype(out_ref.dtype)


def weighted_out_forward(coords, feats, params, *, coord_dim_out=1, eps=1e-5,
                         return_feats=True, n_tile_max=2048,
                         mxu_bf16=True, gelu_bf16=None):
    """Pallas implementation of WeightedOut.forward.

    coords: (b, n, coord_dim, 3)  type-1 features
    feats : (b, n, feat_dim, 1)   type-0 features
    """
    b, n, c, three = coords.shape
    assert three == 3
    f = feats.shape[2]
    o = coord_dim_out
    w1, b1, w2, b2 = params["w1"], params["b1"], params["w2"], params["b2"]
    mid = w1.shape[1]
    assert w1.shape[0] == f + c and w2.shape == (mid, c * o)

    if gelu_bf16 is None:
        gelu_bf16 = mxu_bf16 and _has_bf16_vpu()
    mxu_dtype = jnp.bfloat16 if mxu_bf16 else jnp.float32

    # --- per-batch mean / unbiased std of the coord norms (global reduction over n:
    # tiny plain-JAX pre-pass, one read of coords).  Mirrors torch.std_mean(norm, dim=1);
    # equals the PyTorch broadcast for b == 1 (the case the module is defined for).
    norm = jnp.sqrt(jnp.sum(coords.astype(jnp.float32) ** 2, axis=-1))      # (b, n, c)
    mean = jnp.mean(norm, axis=1)                                           # (b, c)
    ddof = max(n - 1, 1)   # torch std is unbiased; n == 1 would be NaN -> guarded
    var = jnp.sum((norm - mean[:, None, :]) ** 2, axis=1) / ddof
    inv = 1.0 / (jnp.sqrt(var) + eps)                                       # (b, c)

    # --- fold (norm - mean) * inv into the layer-1 weights (cat order: feats, norms).
    w1_f = w1.astype(jnp.float32)
    w1f_t = jnp.transpose(w1_f[:f]).astype(mxu_dtype)                       # (mid, f)
    w1n_t = jnp.transpose(w1_f[f:])                                         # (mid, c)
    w1n_b = w1n_t[None] * inv[:, None, :]                                   # (b, mid, c)
    b1_b = (b1.astype(jnp.float32)[None, :]
            - jnp.einsum("mc,bc->bm", w1n_t, mean * inv))[:, :, None]       # (b, mid, 1)

    # --- layer-2 weights with the (ci,o) -> (ci,o,d) row expansion folded in.
    r = jnp.arange(c * o * 3)                 # expanded row r = ci*(o*3) + o_*3 + d
    w2_t = jnp.transpose(w2.astype(jnp.float32))                            # (c*o, mid)
    w2_exp = w2_t[r // 3].astype(mxu_dtype)                                 # (c*o*3, mid)
    b2_exp = b2.astype(jnp.float32).reshape(c * o, 1)[r // 3]               # (c*o*3, 1)

    # --- tiny 0/1 matrices: xyz-sum (norms), coords row gather, sum over coord_dim.
    sel = jnp.repeat(jnp.eye(c, dtype=jnp.float32), 3, axis=1)              # (c, c*3)
    a_sel = (jnp.arange(c * 3)[None, :]
             == (3 * (r // (o * 3)) + r % 3)[:, None]).astype(jnp.float32)  # (c*o*3, c*3)
    c_sum = (jnp.arange(o * 3)[:, None]
             == (r % (o * 3))[None, :]).astype(jnp.float32)                 # (o*3, c*o*3)

    # --- natural-layout inputs: free reshapes; n padded only to a multiple of 128.
    coords_nat = coords.reshape(b, n, c * 3)
    feats_nat = feats.reshape(b, n, f)
    n_pad = _round_up(n, 128)
    if n_pad != n:
        coords_nat = jnp.pad(coords_nat, ((0, 0), (0, n_pad - n), (0, 0)))
        feats_nat = jnp.pad(feats_nat, ((0, 0), (0, n_pad - n), (0, 0)))
    tn = _pick_tile(n_pad, b, n_tile_max)

    kernel = functools.partial(_weighted_out_kernel,
                               mxu_bf16=mxu_bf16, gelu_bf16=gelu_bf16)
    out_t = pl.pallas_call(
        kernel,
        grid=(b, n_pad // tn),
        in_specs=[
            pl.BlockSpec((1, tn, c * 3), lambda i, j: (i, j, 0)),   # coords (natural)
            pl.BlockSpec((1, tn, f), lambda i, j: (i, j, 0)),       # feats  (natural)
            pl.BlockSpec((c, c * 3), lambda i, j: (0, 0)),          # sel
            pl.BlockSpec((c * o * 3, c * 3), lambda i, j: (0, 0)),  # a_sel
            pl.BlockSpec((o * 3, c * o * 3), lambda i, j: (0, 0)),  # c_sum
            pl.BlockSpec((mid, f), lambda i, j: (0, 0)),            # w1, feats part
            pl.BlockSpec((1, mid, c), lambda i, j: (i, 0, 0)),      # w1, norm part (folded)
            pl.BlockSpec((1, mid, 1), lambda i, j: (i, 0, 0)),      # b1 (folded)
            pl.BlockSpec((c * o * 3, mid), lambda i, j: (0, 0)),    # w2 (expanded)
            pl.BlockSpec((c * o * 3, 1), lambda i, j: (0, 0)),      # b2 (expanded)
        ],
        out_specs=pl.BlockSpec((1, o * 3, tn), lambda i, j: (i, 0, j)),
        out_shape=jax.ShapeDtypeStruct((b, o * 3, n_pad), coords.dtype),
        compiler_params=pltpu.CompilerParams(
            dimension_semantics=("parallel", "parallel")),
    )(coords_nat, feats_nat, sel, a_sel, c_sum, w1f_t, w1n_b, b1_b, w2_exp, b2_exp)

    # Drop residue padding; back to (b, n, coord_dim_out, 3).
    out = out_t[:, :, :n].transpose(0, 2, 1).reshape(b, n, o, 3)
    if return_feats:
        return out, feats
    return out


def weighted_out_reference(coords, feats, params, *, coord_dim_out=1, eps=1e-5):
    """Pure-JAX reference mirroring the PyTorch forward (per-batch stats; exact for b==1)."""
    b, n, c, _ = coords.shape
    norm = jnp.linalg.norm(coords, axis=-1)                            # (b, n, c)
    mean = jnp.mean(norm, axis=1, keepdims=True)
    std = jnp.std(norm, axis=1, keepdims=True, ddof=1)                 # torch unbiased std
    rel = (norm - mean) / (std + eps)
    inp = jnp.concatenate([feats[..., 0], rel], axis=-1)               # (b, n, f + c)
    h = jax.nn.gelu(inp @ params["w1"] + params["b1"], approximate=True)
    w = h @ params["w2"] + params["b2"]                                # (b, n, c * o)
    w = w.reshape(b, n, c, coord_dim_out, 1)
    return jnp.sum(coords[..., None, :] * w, axis=-3)                  # (b, n, o, 3)


if __name__ == "__main__":
    # Small shapes consistent with the module (mid = max(128, dim_in)).
    b, n, coord_dim, feat_dim, coord_dim_out = 2, 16, 4, 12, 2
    dim_in = coord_dim + feat_dim                  # include_norms=True
    mid = max(128, dim_in)
    dim_out = coord_dim * coord_dim_out

    key = jax.random.PRNGKey(0)
    k = jax.random.split(key, 6)
    coords = jax.random.normal(k[0], (b, n, coord_dim, 3), jnp.float32)
    feats = jax.random.normal(k[1], (b, n, feat_dim, 1), jnp.float32)
    params = {
        "w1": jax.random.normal(k[2], (dim_in, mid), jnp.float32) / jnp.sqrt(dim_in),
        "b1": 0.01 * jax.random.normal(k[3], (mid,), jnp.float32),
        "w2": jax.random.normal(k[4], (mid, dim_out), jnp.float32) / jnp.sqrt(mid),
        "b2": 0.01 * jax.random.normal(k[5], (dim_out,), jnp.float32),
    }

    ref = weighted_out_reference(coords, feats, params, coord_dim_out=coord_dim_out)

    # Exact (f32 MXU) path: tight elementwise check.
    out_f32, feats_out = weighted_out_forward(
        coords, feats, params, coord_dim_out=coord_dim_out, mxu_bf16=False)
    jax.block_until_ready(out_f32)
    assert out_f32.shape == (b, n, coord_dim_out, 3), out_f32.shape
    assert feats_out.shape == feats.shape
    err = float(jnp.max(jnp.abs(out_f32 - ref)))
    assert jnp.allclose(out_f32, ref, atol=2e-4, rtol=2e-4), f"f32 mismatch, max err {err}"

    # Fast path (bf16 MXU operands; bf16 GELU where the VPU supports it): looser check.
    out_bf16, _ = weighted_out_forward(
        coords, feats, params, coord_dim_out=coord_dim_out, mxu_bf16=True)
    jax.block_until_ready(out_bf16)
    rel_err = float(jnp.linalg.norm(out_bf16 - ref) / jnp.linalg.norm(ref))
    assert rel_err < 3e-2, f"bf16 path relative L2 error {rel_err}"
    print("KERNEL_OK")
</pallas_src>

<mosaic_0001>
module attributes {stable_mosaic.version = 11 : i64} {
  func.func @_weighted_out_kernel(%arg0: i32, %arg1: i32, %arg2: memref<1x128x12xf32, #tpu.memory_space<vmem>>, %arg3: memref<1x128x12xf32, #tpu.memory_space<vmem>>, %arg4: memref<4x12xf32, #tpu.memory_space<vmem>>, %arg5: memref<24x12xf32, #tpu.memory_space<vmem>>, %arg6: memref<6x24xf32, #tpu.memory_space<vmem>>, %arg7: memref<128x12xf32, #tpu.memory_space<vmem>>, %arg8: memref<1x128x4xf32, #tpu.memory_space<vmem>>, %arg9: memref<1x128x1xf32, #tpu.memory_space<vmem>>, %arg10: memref<24x128xf32, #tpu.memory_space<vmem>>, %arg11: memref<24x1xf32, #tpu.memory_space<vmem>>, %arg12: memref<1x6x128xf32, #tpu.memory_space<vmem>>) attributes {dimension_semantics = [#tpu.dimension_semantics<parallel>, #tpu.dimension_semantics<parallel>], iteration_bounds = array<i64: 2, 1>, scalar_prefetch = 0 : i64, scratch_operands = 0 : i64, tpu.core_type = #tpu.core_type<tc>, window_params = [{transform_indices = @transform_0, window_bounds = array<i64: 1, 128, 12>}, {transform_indices = @transform_1, window_bounds = array<i64: 1, 128, 12>}, {pipeline_mode = #tpu.pipeline_mode<synchronous>, transform_indices = @transform_2, window_bounds = array<i64: 4, 12>}, {pipeline_mode = #tpu.pipeline_mode<synchronous>, transform_indices = @transform_3, window_bounds = array<i64: 24, 12>}, {pipeline_mode = #tpu.pipeline_mode<synchronous>, transform_indices = @transform_4, window_bounds = array<i64: 6, 24>}, {pipeline_mode = #tpu.pipeline_mode<synchronous>, transform_indices = @transform_5, window_bounds = array<i64: 128, 12>}, {transform_indices = @transform_6, window_bounds = array<i64: 1, 128, 4>}, {transform_indices = @transform_7, window_bounds = array<i64: 1, 128, 1>}, {pipeline_mode = #tpu.pipeline_mode<synchronous>, transform_indices = @transform_8, window_bounds = array<i64: 24, 128>}, {pipeline_mode = #tpu.pipeline_mode<synchronous>, transform_indices = @transform_9, window_bounds = array<i64: 24, 1>}, {transform_indices = @transform_10, window_bounds = array<i64: 1, 6, 128>}]} {
    %c0 = arith.constant 0 : index
    %c0_0 = arith.constant 0 : index
    %c0_1 = arith.constant 0 : index
    %0 = vector.load %arg2[%c0, %c0_0, %c0_1] : memref<1x128x12xf32, #tpu.memory_space<vmem>>, vector<1x128x12xf32>
    %1 = vector.shape_cast %0 : vector<1x128x12xf32> to vector<128x12xf32>
    %c0_2 = arith.constant 0 : index
    %c0_3 = arith.constant 0 : index
    %c0_4 = arith.constant 0 : index
    %2 = vector.load %arg3[%c0_2, %c0_3, %c0_4] : memref<1x128x12xf32, #tpu.memory_space<vmem>>, vector<1x128x12xf32>
    %3 = vector.shape_cast %2 : vector<1x128x12xf32> to vector<128x12xf32>
    %c0_5 = arith.constant 0 : index
    %c0_6 = arith.constant 0 : index
    %4 = vector.load %arg4[%c0_5, %c0_6] : memref<4x12xf32, #tpu.memory_space<vmem>>, vector<4x12xf32>
    %5 = arith.mulf %1, %1 : vector<128x12xf32>
    %cst = arith.constant dense<0.000000e+00> : vector<4x128xf32>
    %6 = tpu.matmul %4, %5, %cst {dimension_numbers = #tpu.dot_dimension_numbers<[1], [1], [0], [0], [0, 0, 1, 0], [], []>} : vector<4x12xf32>, vector<128x12xf32>, vector<4x128xf32> -> vector<4x128xf32>
    %7 = math.sqrt %6 : vector<4x128xf32>
    %c0_7 = arith.constant 0 : index
    %c0_8 = arith.constant 0 : index
    %8 = vector.load %arg7[%c0_7, %c0_8] : memref<128x12xf32, #tpu.memory_space<vmem>>, vector<128x12xf32>
    %cst_9 = arith.constant dense<0.000000e+00> : vector<128x128xf32>
    %9 = tpu.matmul %8, %3, %cst_9 {dimension_numbers = #tpu.dot_dimension_numbers<[1], [1], [0], [0], [0, 0, 1, 0], [], []>} : vector<128x12xf32>, vector<128x12xf32>, vector<128x128xf32> -> vector<128x128xf32>
    %c0_10 = arith.constant 0 : index
    %c0_11 = arith.constant 0 : index
    %c0_12 = arith.constant 0 : index
    %10 = vector.load %arg8[%c0_10, %c0_11, %c0_12] : memref<1x128x4xf32, #tpu.memory_space<vmem>>, vector<1x128x4xf32>
    %11 = vector.shape_cast %10 : vector<1x128x4xf32> to vector<128x4xf32>
    %cst_13 = arith.constant dense<0.000000e+00> : vector<128x128xf32>
    %12 = tpu.matmul %11, %7, %cst_13 {dimension_numbers = #tpu.dot_dimension_numbers<[1], [0], [0], [1], [0, 0, 1, 1], [], []>} : vector<128x4xf32>, vector<4x128xf32>, vector<128x128xf32> -> vector<128x128xf32>
    %13 = arith.addf %9, %12 : vector<128x128xf32>
    %c0_14 = arith.constant 0 : index
    %c0_15 = arith.constant 0 : index
    %c0_16 = arith.constant 0 : index
    %14 = vector.load %arg9[%c0_14, %c0_15, %c0_16] : memref<1x128x1xf32, #tpu.memory_space<vmem>>, vector<1x128x1xf32>
    %15 = vector.shape_cast %14 : vector<1x128x1xf32> to vector<128x1xf32>
    %16 = vector.broadcast %15 : vector<128x1xf32> to vector<128x128xf32>
    %17 = arith.addf %13, %16 : vector<128x128xf32>
    %18 = arith.mulf %17, %17 : vector<128x128xf32>
    %19 = arith.mulf %17, %18 : vector<128x128xf32>
    %cst_17 = arith.constant 4.471500e-02 : f32
    %20 = vector.broadcast %cst_17 : f32 to vector<128x128xf32>
    %21 = arith.mulf %20, %19 : vector<128x128xf32>
    %22 = arith.addf %17, %21 : vector<128x128xf32>
    %cst_18 = arith.constant 0.797884583 : f32
    %23 = vector.broadcast %cst_18 : f32 to vector<128x128xf32>
    %24 = arith.mulf %23, %22 : vector<128x128xf32>
    %25 = math.tanh %24 : vector<128x128xf32>
    %cst_19 = arith.constant 1.000000e+00 : f32
    %26 = vector.broadcast %cst_19 : f32 to vector<128x128xf32>
    %27 = arith.addf %26, %25 : vector<128x128xf32>
    %cst_20 = arith.constant 5.000000e-01 : f32
    %28 = vector.broadcast %cst_20 : f32 to vector<128x128xf32>
    %29 = arith.mulf %28, %27 : vector<128x128xf32>
    %30 = arith.mulf %17, %29 : vector<128x128xf32>
    %c0_21 = arith.constant 0 : index
    %c0_22 = arith.constant 0 : index
    %31 = vector.load %arg10[%c0_21, %c0_22] : memref<24x128xf32, #tpu.memory_space<vmem>>, vector<24x128xf32>
    %cst_23 = arith.constant dense<0.000000e+00> : vector<24x128xf32>
    %32 = tpu.matmul %31, %30, %cst_23 {dimension_numbers = #tpu.dot_dimension_numbers<[1], [0], [0], [1], [0, 0, 1, 1], [], []>} : vector<24x128xf32>, vector<128x128xf32>, vector<24x128xf32> -> vector<24x128xf32>
    %c0_24 = arith.constant 0 : index
    %c0_25 = arith.constant 0 : index
    %33 = vector.load %arg11[%c0_24, %c0_25] : memref<24x1xf32, #tpu.memory_space<vmem>>, vector<24x1xf32>
    %34 = vector.broadcast %33 : vector<24x1xf32> to vector<24x128xf32>
    %35 = arith.addf %32, %34 : vector<24x128xf32>
    %c0_26 = arith.constant 0 : index
    %c0_27 = arith.constant 0 : index
    %36 = vector.load %arg5[%c0_26, %c0_27] : memref<24x12xf32, #tpu.memory_space<vmem>>, vector<24x12xf32>
    %c0_28 = arith.constant 0 : index
    %c0_29 = arith.constant 0 : index
    %c0_30 = arith.constant 0 : index
    %37 = vector.load %arg2[%c0_28, %c0_29, %c0_30] : memref<1x128x12xf32, #tpu.memory_space<vmem>>, vector<1x128x12xf32>
    %38 = vector.shape_cast %37 : vector<1x128x12xf32> to vector<128x12xf32>
    %cst_31 = arith.constant dense<0.000000e+00> : vector<24x128xf32>
    %39 = tpu.matmul %36, %38, %cst_31 {dimension_numbers = #tpu.dot_dimension_numbers<[1], [1], [0], [0], [0, 0, 1, 0], [], []>} : vector<24x12xf32>, vector<128x12xf32>, vector<24x128xf32> -> vector<24x128xf32>
    %c0_32 = arith.constant 0 : index
    %c0_33 = arith.constant 0 : index
    %40 = vector.load %arg6[%c0_32, %c0_33] : memref<6x24xf32, #tpu.memory_space<vmem>>, vector<6x24xf32>
    %41 = arith.mulf %39, %35 : vector<24x128xf32>
    %cst_34 = arith.constant dense<0.000000e+00> : vector<6x128xf32>
    %42 = tpu.matmul %40, %41, %cst_34 {dimension_numbers = #tpu.dot_dimension_numbers<[1], [0], [0], [1], [0, 0, 1, 1], [], []>} : vector<6x24xf32>, vector<24x128xf32>, vector<6x128xf32> -> vector<6x128xf32>
    %c0_35 = arith.constant 0 : index
    %c0_36 = arith.constant 0 : index
    %c0_37 = arith.constant 0 : index
    %43 = vector.load %arg12[%c0_35, %c0_36, %c0_37] : memref<1x6x128xf32, #tpu.memory_space<vmem>>, vector<1x6x128xf32>
    %44 = vector.shape_cast %43 : vector<1x6x128xf32> to vector<6x128xf32>
    %45 = vector.shape_cast %42 : vector<6x128xf32> to vector<1x6x128xf32>
    tpu.vector_store %arg12[%c0_35, %c0_36, %c0_37], %45 {strides = array<i32>} : memref<1x6x128xf32, #tpu.memory_space<vmem>>, vector<1x6x128xf32>,
    return
  }
  func.func @transform_0(%arg0: i32, %arg1: i32) -> (i32, i32, i32) {
    %c0_i32 = arith.constant 0 : i32
    %c0_i32_0 = arith.constant 0 : i32
    return %arg0, %arg1, %c0_i32 : i32, i32, i32
  }
  func.func @transform_1(%arg0: i32, %arg1: i32) -> (i32, i32, i32) {
    %c0_i32 = arith.constant 0 : i32
    %c0_i32_0 = arith.constant 0 : i32
    return %arg0, %arg1, %c0_i32 : i32, i32, i32
  }
  func.func @transform_2(%arg0: i32, %arg1: i32) -> (i32, i32) {
    %c0_i32 = arith.constant 0 : i32
    %c0_i32_0 = arith.constant 0 : i32
    %c0_i32_1 = arith.constant 0 : i32
    return %c0_i32, %c0_i32_0 : i32, i32
  }
  func.func @transform_3(%arg0: i32, %arg1: i32) -> (i32, i32) {
    %c0_i32 = arith.constant 0 : i32
    %c0_i32_0 = arith.constant 0 : i32
    %c0_i32_1 = arith.constant 0 : i32
    return %c0_i32, %c0_i32_0 : i32, i32
  }
  func.func @transform_4(%arg0: i32, %arg1: i32) -> (i32, i32) {
    %c0_i32 = arith.constant 0 : i32
    %c0_i32_0 = arith.constant 0 : i32
    %c0_i32_1 = arith.constant 0 : i32
    return %c0_i32, %c0_i32_0 : i32, i32
  }
  func.func @transform_5(%arg0: i32, %arg1: i32) -> (i32, i32) {
    %c0_i32 = arith.constant 0 : i32
    %c0_i32_0 = arith.constant 0 : i32
    %c0_i32_1 = arith.constant 0 : i32
    return %c0_i32, %c0_i32_0 : i32, i32
  }
  func.func @transform_6(%arg0: i32, %arg1: i32) -> (i32, i32, i32) {
    %c0_i32 = arith.constant 0 : i32
    %c0_i32_0 = arith.constant 0 : i32
    %c0_i32_1 = arith.constant 0 : i32
    return %arg0, %c0_i32, %c0_i32_0 : i32, i32, i32
  }
  func.func @transform_7(%arg0: i32, %arg1: i32) -> (i32, i32, i32) {
    %c0_i32 = arith.constant 0 : i32
    %c0_i32_0 = arith.constant 0 : i32
    %c0_i32_1 = arith.constant 0 : i32
    return %arg0, %c0_i32, %c0_i32_0 : i32, i32, i32
  }
  func.func @transform_8(%arg0: i32, %arg1: i32) -> (i32, i32) {
    %c0_i32 = arith.constant 0 : i32
    %c0_i32_0 = arith.constant 0 : i32
    %c0_i32_1 = arith.constant 0 : i32
    return %c0_i32, %c0_i32_0 : i32, i32
  }
  func.func @transform_9(%arg0: i32, %arg1: i32) -> (i32, i32) {
    %c0_i32 = arith.constant 0 : i32
    %c0_i32_0 = arith.constant 0 : i32
    %c0_i32_1 = arith.constant 0 : i32
    return %c0_i32, %c0_i32_0 : i32, i32
  }
  func.func @transform_10(%arg0: i32, %arg1: i32) -> (i32, i32, i32) {
    %c0_i32 = arith.constant 0 : i32
    %c0_i32_0 = arith.constant 0 : i32
    return %arg0, %c0_i32, %arg1 : i32, i32, i32
  }
}

</mosaic_0001>

<bundles_post_ra>
// kernel: tpu_custom_call.1
= control target key start
LH: loop header
LB: loop body
LE: loop exit
PB: predicated region body
PF: predicated region fallthrough
CT: control target
= control target key end

     0   :  { %s2538_s13 = smov 0   ;;  %s2540_s14 = smov 0   ;;  %s3134_s0 = inlined_call_operand.vmem [shape: f32[2,128,12], index: 0, kind: input, shape index: {}]   ;;  %s3135_s1 = inlined_call_operand.vmem [shape: f32[2,128,12], index: 1, kind: input, shape index: {}]   ;;  %s3136_s2 = inlined_call_operand.vmem [shape: f32[4,12], index: 2, kind: input, shape index: {}]   ;;  %s3137_s3 = inlined_call_operand.vmem [shape: f32[24,12], index: 3, kind: input, shape index: {}]   ;;  %s3138_s4 = inlined_call_operand.vmem [shape: f32[6,24], index: 4, kind: input, shape index: {}]   ;;  %s3139_s5 = inlined_call_operand.vmem [shape: f32[128,12], index: 5, kind: input, shape index: {}]   ;;  %s3140_s6 = inlined_call_operand.vmem [shape: f32[2,128,4], index: 6, kind: input, shape index: {}]   ;;  %s3141_s7 = inlined_call_operand.vmem [shape: f32[2,128,1], index: 7, kind: input, shape index: {}]   ;;  %s3142_s8 = inlined_call_operand.vmem [shape: f32[24,128], index: 8, kind: input, shape index: {}]   ;;  %s3143_s9 = inlined_call_operand.vmem [shape: f32[24,1], index: 9, kind: input, shape index: {}]   ;;  %s3144_s10 = inlined_call_operand.vmem [shape: f32[2,6,128], index: 10, kind: output, shape index: {}]  }
   0x1   :  { %s2542_s15 = smov 0  }
   0x2 LB: > { %s32_s16 = sadd.s32 1, %s2473_s14  ;;  %p1818_p0 = scmp.ge.s32.totalorder %s2477_s15, 1  ;;  %s2477_s15 = sphi %s2542_s15, %s20_s15   ;;  %s2473_s14 = sphi %s2540_s14, %s3148_s14   ;;  %s2469_s13 = sphi %s2538_s13, %s3147_s13  }
   0x3   : > { %p34_p1 = scmp.ge.s32.totalorder %s32_s16, 2  ;;  %p370_p2 = scmp.lt.s32.totalorder %s2477_s15, 3 }
   0x5   : > { %s3150_s16 = smov (%p34_p1, %s32_s16), 0  ;;  %p371_p3 = pnand %p1818_p0, %p370_p2 }
   0x6   : > { %p434_p4 = scmp.lt.s32.totalorder (!%p371_p3), %s2469_s13, 1  ;;  %v2479_v0 = vmov (!%p371_p3), 0.0|0.0   ;;  %vm2480_vm0 = vmmov (!%p371_p3), 0   ;;  %v2481_v1 = vmov (!%p371_p3), 0.0   ;;  %vm519_vm1 = vcmask (!%p371_p3), 97280  }
   0x7   : > { %374 = sbr.rel (%p371_p3) target bundleno = 1038 (0x40e), region = 60  ;;  %2236 = vmatprep.subr.bf16.mxu0 (!%p371_p3), %v2479_v0  ;;  %2060 = vmatprep.mubr.msk.f32.mxu0 (!%p371_p3), %vm2480_vm0, %v2481_v1  ;;  %vm2590_vm2 = vmpackc.low (!%p371_p3), %vm519_vm1, %vm519_vm1  ;;  %vm680_vm3 = vcmask (!%p371_p3), 31744   ;;  %vm729_vm5 = vcmask (!%p371_p3), 1043456   ;;  %vm1620_vm7 = vcmask (!%p371_p3), 195584  }
   0xe   : > { %s3152_s13 = smov (!%p434_p4, %s2469_s13), 1 }
   0xf   : > { %s2562_s17 = sshll.u32 %s3152_s13, 7  ;;  %s1827_s24 = sshll.u32 %s3152_s13, 3 }
  0x10   : > { %s2568_s20 = scalar_lea.vmem %s3134_s0, %s2562_s17  ;;  %s2606_s23 = scalar_lea.vmem %s3135_s1, %s2562_s17 }
  0x11   : > { %v2571_v2 = vld [vmem:[%s2568_s20] sm:$0xff]  ;;  %v2574_v3 = vld [vmem:[%s2568_s20 + $0x8] sm:$0xff]  ;;  %v2583_v7 = vld [vmem:[%s2568_s20 + $0x10] sm:$0xff]  ;;  %s2761_s30 = scalar_lea.vmem %s3140_s6, %s2562_s17  ;;  %s469_s26 = scalar_lea.vmem %s3144_s10, %s1827_s24 }
  0x12   : > { %v503_v4 = vmul.f32 %v2571_v2, %v2571_v2  ;;  %v504_v5 = vmul.f32 %v2574_v3, %v2574_v3  ;;  %v2341_v6 = vpack.c.bf16 %v2574_v3, %v2571_v2  ;;  %v2586_v8 = vld [vmem:[%s2568_s20 + $0x18] sm:$0xff]  ;;  %v2597_v11 = vld [vmem:[%s2568_s20 + $0x20] sm:$0xff]  ;;  %v2600_v12 = vld [vmem:[%s2568_s20 + $0x28] sm:$0xff]  ;;  %v505_v22 = vmul.f32 %v2583_v7, %v2583_v7 }
  0x13   : > { %v2345_v10 = vpack.c.bf16 %v2586_v8, %v2583_v7  ;;  %v2349_v14 = vpack.c.bf16 %v2600_v12, %v2597_v11  ;;  %v2611_v15 = vld [vmem:[%s2568_s20 + $0x30] sm:$0xff]  ;;  %v2614_v16 = vld [vmem:[%s2568_s20 + $0x38] sm:$0xff]  ;;  %v2617_v17 = vld [vmem:[%s2568_s20 + $0x40] sm:$0xff]  ;;  %v506_v23 = vmul.f32 %v2586_v8, %v2586_v8  ;;  %v507_v39 = vmul.f32 %v2597_v11, %v2597_v11 }
  0x14   : > { %v2237_v13 = vpack.c.bf16 %v504_v5, %v503_v4  ;;  %v2353_v18 = vpack.c.bf16 %v2614_v16, %v2611_v15  ;;  %v2622_v19 = vld [vmem:[%s2568_s20 + $0x48] sm:$0xff]  ;;  %v2625_v20 = vld [vmem:[%s2568_s20 + $0x50] sm:$0xff]  ;;  %v2628_v21 = vld [vmem:[%s2568_s20 + $0x58] sm:$0xff]  ;;  %v508_v40 = vmul.f32 %v2600_v12, %v2600_v12  ;;  %v509_v45 = vmul.f32 %v2611_v15, %v2611_v15 }
  0x15   : > { %v2357_v24 = vpack.c.bf16 %v2622_v19, %v2617_v17  ;;  %v2639_v25 = vld [vmem:[%s2568_s20 + $0x60] sm:$0xff]  ;;  %v487_v27 = vld [vmem:[%s2606_s23 + $0x8] sm:$0xff]  ;;  %v2361_v28 = vpack.c.bf16 %v2628_v21, %v2625_v20  ;;  %v488_v30 = vld [vmem:[%s2606_s23 + $0x10] sm:$0xff]  ;;  %v2241_v37 = vpack.c.bf16 %v506_v23, %v505_v22  ;;  %v510_v46 = vmul.f32 %v2614_v16, %v2614_v16 }
  0x16   : > { %2239 = vmatpush3.bf16.xpose.msk.msra.mxu0 %vm2590_vm2, %v2237_v13  ;;  %v486_v26 = vld [vmem:[%s2606_s23] sm:$0xff]  ;;  %v2647_v29 = vld [vmem:[%s2568_s20 + $0x68] sm:$0xff]  ;;  %v489_v31 = vld [vmem:[%s2606_s23 + $0x18] sm:$0xff]  ;;  %v2245_v44 = vpack.c.bf16 %v508_v40, %v507_v39  ;;  %v511_v51 = vmul.f32 %v2617_v17, %v2617_v17  ;;  %v512_v52 = vmul.f32 %v2622_v19, %v2622_v19  ;;  %v513_v57 = vmul.f32 %v2625_v20, %v2625_v20 }
  0x17   : > { %2240 = vmatprep.subr.bf16.mxu0 %v2479_v0  ;;  %v2365_v32 = vpack.c.bf16 %v2647_v29, %v2639_v25  ;;  %v2654_v33 = vld [vmem:[%s2568_s20 + $0x70] sm:$0xff]  ;;  %v2657_v34 = vld [vmem:[%s2568_s20 + $0x78] sm:$0xff]  ;;  %v2268_v36 = vpack.c.bf16 %v487_v27, %v486_v26  ;;  %v2274_v38 = vpack.c.bf16 %v489_v31, %v488_v30  ;;  %v490_v41 = vld [vmem:[%s2606_s23 + $0x20] sm:$0xff]  ;;  %v2249_v50 = vpack.c.bf16 %v510_v46, %v509_v45  ;;  %s2854_s20 = scalar_lea.vmem %s3141_s7, %s2562_s17 }
  0x18   : > { %v2369_v35 = vpack.c.bf16 %v2657_v34, %v2654_v33  ;;  %v491_v42 = vld [vmem:[%s2606_s23 + $0x28] sm:$0xff]  ;;  %v492_v47 = vld [vmem:[%s2606_s23 + $0x30] sm:$0xff]  ;;  %v493_v48 = vld [vmem:[%s2606_s23 + $0x38] sm:$0xff]  ;;  %v2253_v56 = vpack.c.bf16 %v512_v52, %v511_v51  ;;  %v514_v58 = vmul.f32 %v2628_v21, %v2628_v21  ;;  %v515_v63 = vmul.f32 %v2639_v25, %v2639_v25 }
  0x19   : > { %2270 = vmatprep.subr.msk.bf16.mxu1 %vm2590_vm2, %v2268_v36  ;;  %v2280_v43 = vpack.c.bf16 %v491_v42, %v490_v41  ;;  %v2286_v49 = vpack.c.bf16 %v493_v48, %v492_v47  ;;  %v494_v53 = vld [vmem:[%s2606_s23 + $0x40] sm:$0xff]  ;;  %v495_v54 = vld [vmem:[%s2606_s23 + $0x48] sm:$0xff]  ;;  %v496_v59 = vld [vmem:[%s2606_s23 + $0x50] sm:$0xff]  ;;  %v516_v4 = vmul.f32 %v2647_v29, %v2647_v29  ;;  %v517_v13 = vmul.f32 %v2654_v33, %v2654_v33 }
  0x1a   : > { %2273 = vmatpush3.bf16.xpose.msk.msra.mxu1 %vm2590_vm2, %v2268_v36  ;;  %v2292_v55 = vpack.c.bf16 %v495_v54, %v494_v53  ;;  %v497_v60 = vld [vmem:[%s2606_s23 + $0x58] sm:$0xff]  ;;  %v2257_v62 = vpack.c.bf16 %v514_v58, %v513_v57  ;;  %v518_v22 = vmul.f32 %v2657_v34, %v2657_v34  ;;  %v502_v26 = vld [vmem:[%s3136_s2] sm:$0xf]  ;;  %v499_v30 = vld [vmem:[%s2606_s23 + $0x68] sm:$0xff]  ;;  %v2482_v15 = vmov 0  }
  0x1b   : > { %2276 = vmatprep.subr.msk.bf16.mxu1 %vm2590_vm2, %v2274_v38  ;;  %v2298_v61 = vpack.c.bf16 %v497_v60, %v496_v59  ;;  %v2261_v5 = vpack.c.bf16 %v516_v4, %v515_v63  ;;  %v498_v27 = vld [vmem:[%s2606_s23 + $0x60] sm:$0xff]  ;;  %v500_v36 = vld [vmem:[%s2606_s23 + $0x70] sm:$0xff]  ;;  %v649_v41 = vld [vmem:[%s3139_s5 + $0x8] sm:$0xff]  ;;  %2419 = vset.pattern.permute.xlu0 %v2482_v15 }
  0x1c   : > { %v2265_v23 = vpack.c.bf16 %v518_v22, %v517_v13  ;;  %v2304_v31 = vpack.c.bf16 %v499_v30, %v498_v27  ;;  %v648_v39 = vld [vmem:[%s3139_s5] sm:$0xff]  ;;  %v650_v42 = vld [vmem:[%s3139_s5 + $0x10] sm:$0xff]  ;;  %v653_v2 = vld [vmem:[%s3139_s5 + $0x28] sm:$0xff]  ;;  %2420 = vset.pattern.permute.xlu1 %v2482_v15 }
  0x1d   : > { %2121 = vmatprep.mubr.msk.f32.mxu1 %vm519_vm1, %v648_v39  ;;  %v664_v40 = vld [vmem:[%s2761_s30] sm:$0xff]  ;;  %v654_v3 = vld [vmem:[%s3139_s5 + $0x30] sm:$0xff]  ;;  %v657_v7 = vld [vmem:[%s3139_s5 + $0x48] sm:$0xff] }
  0x1e   : > { %2243 = vmatpush3.bf16.xpose.msk.msra.mxu0 %vm2590_vm2, %v2241_v37  ;;  %v501_v37 = vld [vmem:[%s2606_s23 + $0x78] sm:$0xff]  ;;  %v656_v45 = vld [vmem:[%s3139_s5 + $0x40] sm:$0xff]  ;;  %v658_v8 = vld [vmem:[%s3139_s5 + $0x50] sm:$0xff] }
  0x1f   : > { %2244 = vmatprep.subr.bf16.mxu0 %v2479_v0  ;;  %v660_v46 = vld [vmem:[%s3139_s5 + $0x60] sm:$0xff]  ;;  %v661_v11 = vld [vmem:[%s3139_s5 + $0x68] sm:$0xff]  ;;  %v662_v12 = vld [vmem:[%s3139_s5 + $0x70] sm:$0xff] }
  0x20   : > { %v1119_v16 = vld [vmem:[%s2854_s20] sm:$0xff]  ;;  %v1120_v47 = vld [vmem:[%s2854_s20 + $0x8] sm:$0xff]  ;;  %v1122_v48 = vld [vmem:[%s2854_s20 + $0x18] sm:$0xff] }
  0x21   : > { %1137 = vperm.xlu0 %2419, %v1119_v16   ;;  %v1125_v51 = vld [vmem:[%s2854_s20 + $0x30] sm:$0xff]  ;;  %v1126_v52 = vld [vmem:[%s2854_s20 + $0x38] sm:$0xff]  ;;  %v1127_v17 = vld [vmem:[%s2854_s20 + $0x40] sm:$0xff] }
  0x22   : > { %2279 = vmatpush3.bf16.xpose.msk.msra.mxu1 %vm2590_vm2, %v2274_v38  ;;  %v2310_v38 = vpack.c.bf16 %v501_v37, %v500_v36  ;;  %v1128_v19 = vld [vmem:[%s2854_s20 + $0x48] sm:$0xff]  ;;  %v1130_v53 = vld [vmem:[%s2854_s20 + $0x58] sm:$0xff]  ;;  %v1131_v20 = vld [vmem:[%s2854_s20 + $0x60] sm:$0xff] }
  0x23   : > { %2282 = vmatprep.subr.msk.bf16.mxu1 %vm2590_vm2, %v2280_v43  ;;  %v1132_v21 = vld [vmem:[%s2854_s20 + $0x68] sm:$0xff]  ;;  %v1134_v54 = vld [vmem:[%s2854_s20 + $0x78] sm:$0xff]  ;;  %v1378_v25 = vld [vmem:[%s3143_s9] sm:$0xff] }
  0x24   : > { %v1379_v29 = vld [vmem:[%s3143_s9 + $0x8] sm:$0xff]  ;;  %v666_v59 = vld [vmem:[%s2761_s30 + $0x10] sm:$0xff]  ;;  %v667_v60 = vld [vmem:[%s2761_s30 + $0x18] sm:$0xff] }
  0x25   : > { %1142 = vperm.xlu0 %2419, %v1120_v47   ;;  %v665_v58 = vld [vmem:[%s2761_s30 + $0x8] sm:$0xff]  ;;  %v670_v63 = vld [vmem:[%s2761_s30 + $0x30] sm:$0xff]  ;;  %v671_v4 = vld [vmem:[%s2761_s30 + $0x38] sm:$0xff] }
  0x26   : > { %2247 = vmatpush3.bf16.xpose.msk.msra.mxu0 %vm2590_vm2, %v2245_v44  ;;  %v652_v44 = vld [vmem:[%s3139_s5 + $0x20] sm:$0xff]  ;;  %v673_v13 = vld [vmem:[%s2761_s30 + $0x48] sm:$0xff]  ;;  %v674_v22 = vld [vmem:[%s2761_s30 + $0x50] sm:$0xff] }
  0x27   : > { %2248 = vmatprep.subr.bf16.mxu0 %v2479_v0  ;;  %v677_v27 = vld [vmem:[%s2761_s30 + $0x68] sm:$0xff]  ;;  %v678_v30 = vld [vmem:[%s2761_s30 + $0x70] sm:$0xff] }
  0x2a   : > { %2285 = vmatpush3.bf16.xpose.msk.msra.mxu1 %vm2590_vm2, %v2280_v43  ;;  %v651_v43 = vld [vmem:[%s3139_s5 + $0x18] sm:$0xff] }
  0x2b   : > { %2288 = vmatprep.subr.msk.bf16.mxu1 %vm2590_vm2, %v2286_v49 }
  0x2e   : > { %2251 = vmatpush3.bf16.xpose.msk.msra.mxu0 %vm2590_vm2, %v2249_v50  ;;  %v1124_v50 = vld [vmem:[%s2854_s20 + $0x28] sm:$0xff] }
  0x2f   : > { %2252 = vmatprep.subr.bf16.mxu0 %v2479_v0 }
  0x32   : > { %2291 = vmatpush3.bf16.xpose.msk.msra.mxu1 %vm2590_vm2, %v2286_v49  ;;  %v1123_v49 = vld [vmem:[%s2854_s20 + $0x20] sm:$0xff] }
  0x33   : > { %2294 = vmatprep.subr.msk.bf16.mxu1 %vm2590_vm2, %v2292_v55  ;;  %1157 = vperm.xlu0 %2419, %v1123_v49  }
  0x36   : > { %2255 = vmatpush3.bf16.xpose.msk.msra.mxu0 %vm2590_vm2, %v2253_v56 }
  0x37   : > { %2256 = vmatprep.subr.bf16.mxu0 %v2479_v0  ;;  %1167 = vperm.xlu0 %2419, %v1125_v51  }
  0x3a   : > { %2297 = vmatpush3.bf16.xpose.msk.msra.mxu1 %vm2590_vm2, %v2292_v55 }
  0x3b   : > { %2300 = vmatprep.subr.msk.bf16.mxu1 %vm2590_vm2, %v2298_v61  ;;  %1177 = vperm.xlu0 %2419, %v1127_v17  }
  0x3e   : > { %2259 = vmatpush3.bf16.xpose.msk.msra.mxu0 %vm2590_vm2, %v2257_v62  ;;  %v669_v62 = vld [vmem:[%s2761_s30 + $0x28] sm:$0xff] }
  0x3f   : > { %2260 = vmatprep.subr.bf16.mxu0 %v2479_v0 }
  0x42   : > { %2303 = vmatpush3.bf16.xpose.msk.msra.mxu1 %vm2590_vm2, %v2298_v61  ;;  %v668_v61 = vld [vmem:[%s2761_s30 + $0x20] sm:$0xff] }
  0x43   : > { %2306 = vmatprep.subr.msk.bf16.mxu1 %vm2590_vm2, %v2304_v31 }
  0x46   : > { %2263 = vmatpush3.bf16.xpose.msk.msra.mxu0 %vm2590_vm2, %v2261_v5  ;;  %v672_v5 = vld [vmem:[%s2761_s30 + $0x40] sm:$0xff] }
  0x47   : > { %2264 = vmatprep.subr.bf16.mxu0 %v2479_v0 }
  0x4a   : > { %2309 = vmatpush3.bf16.xpose.msk.msra.mxu1 %vm2590_vm2, %v2304_v31  ;;  %v679_v31 = vld [vmem:[%s2761_s30 + $0x78] sm:$0xff] }
  0x4b   : > { %2312 = vmatprep.subr.msk.bf16.mxu1 %vm2590_vm2, %v2310_v38 }
  0x4e   : > { %2267 = vmatpush3.bf16.xpose.msk.msra.mxu0 %vm2590_vm2, %v2265_v23  ;;  %v675_v23 = vld [vmem:[%s2761_s30 + $0x58] sm:$0xff] }
  0x52   : > { %2315 = vmatpush3.bf16.xpose.msk.msra.mxu1 %vm2590_vm2, %v2310_v38 }
  0x53   : > { %2340 = vmatprep.subr.bf16.mxu1 %v2479_v0 }
  0x55   : > { %2061 = vmatmul.mubr.msk.f32.vlgmr.msra.gmra.mrb[0].mxu0 %vm519_vm1, %v502_v26  ;;  %v676_v26 = vld [vmem:[%s2761_s30 + $0x60] sm:$0xff] }
  0x56   : > { %2065 = vmatprep.mubr.msk.f32.mxu0 %vm680_vm3, %v664_v40 }
  0x59   : > { %2122 = vmatmul.mubr.msk.f32.vlgmr.msra.gmra.mrb[0].mxu1 %vm519_vm1, %v649_v41 }
  0x5a   : > { %2343 = vmatpush3.bf16.xpose.msk.msra.mxu1 %vm2590_vm2, %v2341_v6  ;;  %2124 = vmatprep.mubr.msk.f32.mxu1 %vm519_vm1, %v650_v42  ;;  %v655_v6 = vld [vmem:[%s3139_s5 + $0x38] sm:$0xff] }
  0x5b   : > { %2344 = vmatprep.subr.bf16.mxu1 %v2479_v0 }
  0x5d   : > { %2125 = vmatmul.mubr.msk.f32.gmra.mrb[2].mxu1 %vm519_vm1, %v651_v43 }
  0x5e   : > { %2127 = vmatprep.mubr.msk.f32.mxu1 %vm519_vm1, %v652_v44 }
  0x61   : > { %2128 = vmatmul.mubr.msk.f32.gmra.mrb[4].mxu1 %vm519_vm1, %v653_v2 }
  0x62   : > { %2347 = vmatpush3.bf16.xpose.msk.msra.mxu1 %vm2590_vm2, %v2345_v10  ;;  %2130 = vmatprep.mubr.msk.f32.mxu1 %vm519_vm1, %v654_v3  ;;  %v659_v10 = vld [vmem:[%s3139_s5 + $0x58] sm:$0xff] }
  0x63   : > { %2348 = vmatprep.subr.bf16.mxu1 %v2479_v0 }
  0x65   : > { %2131 = vmatmul.mubr.msk.f32.gmra.mrb[6].mxu1 %vm519_vm1, %v655_v6 }
  0x66   : > { %2133 = vmatprep.mubr.msk.f32.mxu1 %vm519_vm1, %v656_v45 }
  0x69   : > { %2134 = vmatmul.mubr.msk.f32.gmra.mrb[8].mxu1 %vm519_vm1, %v657_v7 }
  0x6a   : > { %2351 = vmatpush3.bf16.xpose.msk.msra.mxu1 %vm2590_vm2, %v2349_v14  ;;  %2136 = vmatprep.mubr.msk.f32.mxu1 %vm519_vm1, %v658_v8  ;;  %v663_v14 = vld [vmem:[%s3139_s5 + $0x78] sm:$0xff] }
  0x6b   : > { %2352 = vmatprep.subr.bf16.mxu1 %v2479_v0 }
  0x6d   : > { %2137 = vmatmul.mubr.msk.f32.gmra.mrb[10].mxu1 %vm519_vm1, %v659_v10 }
  0x6e   : > { %2139 = vmatprep.mubr.msk.f32.mxu1 %vm519_vm1, %v660_v46  ;;  %v1476_v46 = vld [vmem:[%s3137_s3] sm:$0xff] }
  0x71   : > { %2140 = vmatmul.mubr.msk.f32.gmra.mrb[12].mxu1 %vm519_vm1, %v661_v11  ;;  %v1477_v11 = vld [vmem:[%s3137_s3 + $0x8] sm:$0xff] }
  0x72   : > { %2355 = vmatpush3.bf16.xpose.msk.msra.mxu1 %vm2590_vm2, %v2353_v18  ;;  %2142 = vmatprep.mubr.msk.f32.mxu1 %vm519_vm1, %v662_v12  ;;  %v1121_v18 = vld [vmem:[%s2854_s20 + $0x10] sm:$0xff] }
  0x73   : > { %2356 = vmatprep.subr.bf16.mxu1 %v2479_v0  ;;  %1147 = vperm.xlu1 %2420, %v1121_v18   ;;  %v1478_v12 = vld [vmem:[%s3137_s3 + $0x10] sm:$0xff] }
  0x75   : > { %2143 = vmatmul.mubr.msk.f32.gmra.mrb[14].mxu1 %vm519_vm1, %v663_v14 }
  0x76   : > { %2218 = vmatprep.mubr.msk.f32.mxu1 %vm2480_vm0, %v2481_v1 }
  0x77   : > { %1152 = vperm.xlu1 %2420, %v1122_v48  }
  0x7a   : > { %2359 = vmatpush3.bf16.xpose.msk.msra.mxu1 %vm2590_vm2, %v2357_v24  ;;  %v1129_v24 = vld [vmem:[%s2854_s20 + $0x50] sm:$0xff] }
  0x7b   : > { %2360 = vmatprep.subr.bf16.mxu1 %v2479_v0  ;;  %1162 = vperm.xlu1 %2420, %v1124_v50  }
  0x7c   : > { %1187 = vperm.xlu0 %2419, %v1129_v24  }
  0x7f   : > { %1172 = vperm.xlu1 %2420, %v1126_v52  }
  0x80   : > { %1197 = vperm.xlu0 %2419, %v1131_v20  }
  0x82   : > { %2363 = vmatpush3.bf16.xpose.msk.msra.mxu1 %vm2590_vm2, %v2361_v28  ;;  %v1133_v28 = vld [vmem:[%s2854_s20 + $0x70] sm:$0xff] }
  0x83   : > { %2364 = vmatprep.subr.bf16.mxu1 %v2479_v0  ;;  %1182 = vperm.xlu1 %2420, %v1128_v19  }
  0x84   : > { %1207 = vperm.xlu0 %2419, %v1133_v28  }
  0x87   : > { %1192 = vperm.xlu1 %2420, %v1130_v53  }
  0x88   : > { %1383 = vperm.xlu0 %2419, %v1378_v25  }
  0x8a   : > { %2367 = vmatpush3.bf16.xpose.msk.msra.mxu1 %vm2590_vm2, %v2365_v32  ;;  %v1380_v32 = vld [vmem:[%s3143_s9 + $0x10] sm:$0xff] }
  0x8b   : > { %2368 = vmatprep.subr.bf16.mxu1 %v2479_v0  ;;  %1202 = vperm.xlu1 %2420, %v1132_v21  }
  0x8c   : > { %1393 = vperm.xlu0 %2419, %v1380_v32  }
  0x8f   : > { %1212 = vperm.xlu1 %2420, %v1134_v54  }
  0x92   : > { %2371 = vmatpush3.bf16.xpose.msk.msra.mxu1 %vm2590_vm2, %v2369_v35 }
  0x93   : > { %1388 = vperm.xlu1 %2420, %v1379_v29  }
  0x99   : > { %2219 = vmatmul.mubr.msk.f32.vlgmr.msra.gmra.mrb[16].mxu1 %vm519_vm1, %v1476_v46 }
  0x9a   : > { %2221 = vmatprep.mubr.msk.f32.mxu1 %vm2480_vm0, %v2481_v1 }
  0x9d   : > { %2222 = vmatmul.mubr.msk.f32.gmra.mrb[18].mxu1 %vm519_vm1, %v1477_v11 }
  0x9e   : > { %2224 = vmatprep.mubr.msk.f32.mxu1 %vm2480_vm0, %v2481_v1 }
  0xa0   : > { %v1138_v15 = vpop.permute.xlu0 %1137 }
  0xa1   : > { %2225 = vmatmul.mubr.msk.f32.gmra.mrb[20].mxu1 %vm519_vm1, %v1478_v12 }
  0xa4   : > { %v1143_v18 = vpop.permute.xlu0 %1142 }
  0xb2   : > { %v1158_v49 = vpop.permute.xlu0 %1157 }
  0xb6   : > { %v1168_v29 = vpop.permute.xlu0 %1167 }
  0xf2   : > { %v1148_v14 = vpop.permute.xlu1 %1147 }
  0xf6   : > { %v1153_v16 = vpop.permute.xlu1 %1152 }
  0xfa   : > { %v1163_v47 = vpop.permute.xlu1 %1162 }
  0xfe   : > { %v1173_v28 = vpop.permute.xlu1 %1172 }
 0x128   : > { %v637_v9 = vpop.f32.mrb[0].mxu0 }
 0x129   : > { %2421 = vrsqrt.f32 %v637_v9  ;;  %v2062_v33 = vpop.f32.mrb[1].mxu0  ;;  %vm643_vm4 = vcmp.eq.f32.partialorder %v637_v9, inf  ;;  %v646_v55 = vand.u32 2147483648, %v637_v9  ;;  %vm645_vm6 = vcmp.eq.f32.partialorder %v637_v9, 0.0 }
 0x12c   : > { %v2123_v36 = vpop.f32.mrb[0].mxu1 }
 0x12d   : > { %v1040_v37 = vpop.f32.mrb[1].mxu1 }
 0x130   : > { %v2126_v38 = vpop.f32.mrb[2].mxu1 }
 0x131   : > { %v1050_v39 = vpop.f32.mrb[3].mxu1 }
 0x133   : > { %v2422_v34 = vpop.eup %2421 }
 0x134   : > { %v642_v35 = vmul.f32 %v2422_v34, %v637_v9  ;;  %v2129_v40 = vpop.f32.mrb[4].mxu1 }
 0x135   : > { %v1060_v41 = vpop.f32.mrb[5].mxu1 }
 0x136   : > { %v644_v56 = vsel %vm643_vm4, %v637_v9, %v642_v35 }
 0x137   : > { %v647_v57 = vsel %vm645_vm6, %v646_v55, %v644_v56 }
 0x138   : > { %2063 = vmatprep.subr.msk.mxu0 %vm729_vm5, %v647_v57  ;;  %v2132_v42 = vpop.f32.mrb[6].mxu1 }
 0x139   : > { %2064 = vmatpush3.msk.msra.mxu0 %vm729_vm5, %v647_v57  ;;  %v2939_v43 = vpop.f32.mrb[7].mxu1 }
 0x13a   : > { %2066 = vmatmul.mubr.msk.f32.vlgmr.msra.gmra.mrb[2].mxu0 %vm680_vm3, %v665_v58  ;;  %2316 = vmatprep.subr.bf16.mxu0 %v2479_v0 }
 0x13b   : > { %2068 = vmatprep.mubr.msk.f32.mxu0 %vm680_vm3, %v666_v59 }
 0x13c   : > { %v2941_v44 = vpop.f32.mrb[8].mxu1 }
 0x13d   : > { %v2943_v2 = vpop.f32.mrb[9].mxu1 }
 0x13e   : > { %2069 = vmatmul.mubr.msk.f32.gmra.mrb[4].mxu0 %vm680_vm3, %v667_v60 }
 0x13f   : > { %2071 = vmatprep.mubr.msk.f32.mxu0 %vm680_vm3, %v668_v61 }
 0x140   : > { %v2945_v3 = vpop.f32.mrb[10].mxu1 }
 0x141   : > { %v2947_v6 = vpop.f32.mrb[11].mxu1 }
 0x142   : > { %2072 = vmatmul.mubr.msk.f32.gmra.mrb[6].mxu0 %vm680_vm3, %v669_v62 }
 0x143   : > { %2074 = vmatprep.mubr.msk.f32.mxu0 %vm680_vm3, %v670_v63 }
 0x144   : > { %v2949_v45 = vpop.f32.mrb[12].mxu1 }
 0x145   : > { %v2951_v7 = vpop.f32.mrb[13].mxu1 }
 0x146   : > { %2075 = vmatmul.mubr.msk.f32.gmra.mrb[8].mxu0 %vm680_vm3, %v671_v4 }
 0x147   : > { %2077 = vmatprep.mubr.msk.f32.mxu0 %vm680_vm3, %v672_v5  ;;  %v1183_v5 = vpop.permute.xlu1 %1182 }
 0x148   : > { %v2953_v8 = vpop.f32.mrb[14].mxu1 }
 0x149   : > { %v2955_v10 = vpop.f32.mrb[15].mxu1 }
 0x14a   : > { %2078 = vmatmul.mubr.msk.f32.gmra.mrb[10].mxu0 %vm680_vm3, %v673_v13 }
 0x14b   : > { %2080 = vmatprep.mubr.msk.f32.mxu0 %vm680_vm3, %v674_v22 }
 0x14e   : > { %2081 = vmatmul.mubr.msk.f32.gmra.mrb[12].mxu0 %vm680_vm3, %v675_v23 }
 0x14f   : > { %2083 = vmatprep.mubr.msk.f32.mxu0 %vm680_vm3, %v676_v26 }
 0x152   : > { %2084 = vmatmul.mubr.msk.f32.gmra.mrb[14].mxu0 %vm680_vm3, %v677_v27  ;;  %v1178_v27 = vpop.permute.xlu0 %1177 }
 0x153   : > { %2086 = vmatprep.mubr.msk.f32.mxu0 %vm680_vm3, %v678_v30 }
 0x156   : > { %2087 = vmatmul.mubr.msk.f32.gmra.mrb[16].mxu0 %vm680_vm3, %v679_v31 }
 0x157   : > { %2177 = vmatprep.mubr.msk.f32.mxu0 %vm2480_vm0, %v2481_v1 }
 0x20d   : > { %v2067_v48 = vpop.f32.mrb[2].mxu0 }
 0x20e   : > { %v1046_v50 = vadd.f32 %v2123_v36, %v2067_v48  ;;  %v799_v51 = vpop.f32.mrb[3].mxu0 }
 0x20f   : > { %v1041_v52 = vadd.f32 %v1040_v37, %v799_v51  ;;  %v1193_v51 = vpop.permute.xlu1 %1192 }
 0x210   : > { %v2973_v17 = vadd.f32 %v1143_v18, %v1046_v50 }
 0x211   : > { %v2975_v19 = vadd.f32 %v1138_v15, %v1041_v52  ;;  %v2070_v24 = vpop.f32.mrb[4].mxu0 }
 0x212   : > { %v1232_v53 = vmul.f32 %v2973_v17, %v2973_v17  ;;  %v1056_v20 = vadd.f32 %v2126_v38, %v2070_v24  ;;  %v809_v21 = vpop.f32.mrb[5].mxu0 }
 0x213   : > { %v1231_v54 = vmul.f32 %v2975_v19, %v2975_v19  ;;  %v1051_v25 = vadd.f32 %v1050_v39, %v809_v21  ;;  %v1188_v21 = vpop.permute.xlu0 %1187 }
 0x214   : > { %v1248_v32 = vmul.f32 %v1232_v53, %v2973_v17  ;;  %v2982_v9 = vadd.f32 %v1153_v16, %v1056_v20 }
 0x215   : > { %v1247_v33 = vmul.f32 %v1231_v54, %v2975_v19  ;;  %v2985_v34 = vadd.f32 %v1148_v14, %v1051_v25  ;;  %v2073_v35 = vpop.f32.mrb[6].mxu0 }
 0x216   : > { %v1264_v55 = vmul.f32 0.044715, %v1248_v32  ;;  %v1234_v56 = vmul.f32 %v2982_v9, %v2982_v9  ;;  %v1066_v57 = vadd.f32 %v2129_v40, %v2073_v35  ;;  %v819_v58 = vpop.f32.mrb[7].mxu0 }
 0x217   : > { %v1263_v59 = vmul.f32 0.044715, %v1247_v33  ;;  %v1233_v60 = vmul.f32 %v2985_v34, %v2985_v34  ;;  %v1061_v61 = vadd.f32 %v1060_v41, %v819_v58 }
 0x218   : > { %v1280_v62 = vadd.f32 %v1264_v55, %v2973_v17  ;;  %v1250_v63 = vmul.f32 %v1234_v56, %v2982_v9  ;;  %v2993_v4 = vadd.f32 %v1163_v47, %v1066_v57 }
 0x219   : > { %v1279_v13 = vadd.f32 %v1263_v59, %v2975_v19  ;;  %v1249_v22 = vmul.f32 %v1233_v60, %v2985_v34  ;;  %v2997_v23 = vadd.f32 %v1158_v49, %v1061_v61  ;;  %v2076_v26 = vpop.f32.mrb[8].mxu0 }
 0x21a   : > { %v1296_v30 = vmul.f32 0.7978846, %v1280_v62  ;;  %v1266_v31 = vmul.f32 0.044715, %v1250_v63  ;;  %v1236_v36 = vmul.f32 %v2993_v4, %v2993_v4  ;;  %v1076_v37 = vadd.f32 %v2132_v42, %v2076_v26  ;;  %v829_v38 = vpop.f32.mrb[9].mxu0 }
 0x21b   : > { %v1295_v39 = vmul.f32 0.7978846, %v1279_v13  ;;  %v1265_v40 = vmul.f32 0.044715, %v1249_v22  ;;  %v1235_v41 = vmul.f32 %v2997_v23, %v2997_v23  ;;  %v1071_v46 = vadd.f32 %v2939_v43, %v829_v38  ;;  %v1203_v13 = vpop.permute.xlu1 %1202 }
 0x21c   : > { %2423 = vtanh.f32 %v1296_v30  ;;  %v1282_v11 = vadd.f32 %v1266_v31, %v2982_v9  ;;  %v1252_v12 = vmul.f32 %v1236_v36, %v2993_v4  ;;  %v3006_v14 = vadd.f32 %v1173_v28, %v1076_v37  ;;  %v1198_v31 = vpop.permute.xlu0 %1197 }
 0x21d   : > { %2425 = vtanh.f32 %v1295_v39  ;;  %v1281_v15 = vadd.f32 %v1265_v40, %v2985_v34  ;;  %v1251_v42 = vmul.f32 %v1235_v41, %v2997_v23  ;;  %v3010_v16 = vadd.f32 %v1168_v29, %v1071_v46  ;;  %v2079_v18 = vpop.f32.mrb[10].mxu0 }
 0x21e   : > { %v1298_v47 = vmul.f32 0.7978846, %v1282_v11  ;;  %v1268_v48 = vmul.f32 0.044715, %v1252_v12  ;;  %v1238_v43 = vmul.f32 %v3006_v14, %v3006_v14  ;;  %v1086_v49 = vadd.f32 %v2941_v44, %v2079_v18  ;;  %v839_v50 = vpop.f32.mrb[11].mxu0 }
 0x21f   : > { %v1297_v52 = vmul.f32 0.7978846, %v1281_v15  ;;  %v1267_v24 = vmul.f32 0.044715, %v1251_v42  ;;  %v1237_v53 = vmul.f32 %v3010_v16, %v3010_v16  ;;  %v1081_v20 = vadd.f32 %v2943_v2, %v839_v50 }
 0x220   : > { %2427 = vtanh.f32 %v1298_v47  ;;  %v1284_v28 = vadd.f32 %v1268_v48, %v2993_v4  ;;  %v1254_v54 = vmul.f32 %v1238_v43, %v3006_v14  ;;  %v3020_v25 = vadd.f32 %v1183_v5, %v1086_v49 }
 0x221   : > { %2429 = vtanh.f32 %v1297_v52  ;;  %v1283_v44 = vadd.f32 %v1267_v24, %v2997_v23  ;;  %v1253_v29 = vmul.f32 %v1237_v53, %v3010_v16  ;;  %v3024_v32 = vadd.f32 %v1178_v27, %v1081_v20  ;;  %v2082_v33 = vpop.f32.mrb[12].mxu0  ;;  %v1213_v20 = vpop.permute.xlu1 %1212 }
 0x222   : > { %v1300_v35 = vmul.f32 0.7978846, %v1284_v28  ;;  %v1270_v55 = vmul.f32 0.044715, %v1254_v54  ;;  %v1240_v2 = vmul.f32 %v3020_v25, %v3020_v25  ;;  %v1096_v56 = vadd.f32 %v2945_v3, %v2082_v33  ;;  %v849_v57 = vpop.f32.mrb[13].mxu0 }
 0x223   : > { %v1299_v58 = vmul.f32 0.7978846, %v1283_v44  ;;  %v1269_v59 = vmul.f32 0.044715, %v1253_v29  ;;  %v1239_v60 = vmul.f32 %v3024_v32, %v3024_v32  ;;  %v1091_v61 = vadd.f32 %v2947_v6, %v849_v57  ;;  %v1208_v29 = vpop.permute.xlu0 %1207 }
 0x224   : > { %2431 = vtanh.f32 %v1300_v35  ;;  %v1286_v62 = vadd.f32 %v1270_v55, %v3006_v14  ;;  %v1256_v63 = vmul.f32 %v1240_v2, %v3020_v25  ;;  %v3034_v5 = vadd.f32 %v1193_v51, %v1096_v56 }
 0x225   : > { %2433 = vtanh.f32 %v1299_v58  ;;  %v1285_v22 = vadd.f32 %v1269_v59, %v3010_v16  ;;  %v1255_v3 = vmul.f32 %v1239_v60, %v3024_v32  ;;  %v3038_v26 = vadd.f32 %v1188_v21, %v1091_v61  ;;  %v2085_v27 = vpop.f32.mrb[14].mxu0 }
 0x226   : > { %v2424_v30 = vpop.eup %2423  ;;  %v1302_v36 = vmul.f32 0.7978846, %v1286_v62  ;;  %v1272_v6 = vmul.f32 0.044715, %v1256_v63  ;;  %v1242_v37 = vmul.f32 %v3034_v5, %v3034_v5  ;;  %v1106_v38 = vadd.f32 %v2949_v45, %v2085_v27  ;;  %v859_v39 = vpop.f32.mrb[15].mxu0 }
 0x227   : > { %v2426_v40 = vpop.eup %2425  ;;  %v1301_v41 = vmul.f32 0.7978846, %v1285_v22  ;;  %v1271_v46 = vmul.f32 0.044715, %v1255_v3  ;;  %v1241_v11 = vmul.f32 %v3038_v26, %v3038_v26  ;;  %v1101_v12 = vadd.f32 %v2951_v7, %v859_v39 }
 0x228   : > { %2435 = vtanh.f32 %v1302_v36  ;;  %v1288_v15 = vadd.f32 %v1272_v6, %v3020_v25  ;;  %v1258_v42 = vmul.f32 %v1242_v37, %v3034_v5  ;;  %v3048_v18 = vadd.f32 %v1203_v13, %v1106_v38 }
 0x229   : > { %2437 = vtanh.f32 %v1301_v41  ;;  %v1287_v47 = vadd.f32 %v1271_v46, %v3024_v32  ;;  %v1257_v45 = vmul.f32 %v1241_v11, %v3038_v26  ;;  %v3052_v48 = vadd.f32 %v1198_v31, %v1101_v12  ;;  %v2088_v43 = vpop.f32.mrb[16].mxu0 }
 0x22a   : > { %v2428_v49 = vpop.eup %2427  ;;  %v1304_v50 = vmul.f32 0.7978846, %v1288_v15  ;;  %v1274_v51 = vmul.f32 0.044715, %v1258_v42  ;;  %v1244_v7 = vmul.f32 %v3048_v18, %v3048_v18  ;;  %v1116_v52 = vadd.f32 %v2953_v8, %v2088_v43  ;;  %v869_v24 = vpop.f32.mrb[17].mxu0 }
 0x22b   : > { %v2430_v53 = vpop.eup %2429  ;;  %v1303_v21 = vmul.f32 0.7978846, %v1287_v47  ;;  %v1273_v28 = vmul.f32 0.044715, %v1257_v45  ;;  %v1243_v54 = vmul.f32 %v3052_v48, %v3052_v48  ;;  %v1111_v44 = vadd.f32 %v2955_v10, %v869_v24 }
 0x22c   : > { %2439 = vtanh.f32 %v1304_v50  ;;  %v1290_v33 = vadd.f32 %v1274_v51, %v3034_v5  ;;  %v1260_v35 = vmul.f32 %v1244_v7, %v3048_v18  ;;  %v3062_v55 = vadd.f32 %v1213_v20, %v1116_v52 }
 0x22d   : > { %2441 = vtanh.f32 %v1303_v21  ;;  %v1289_v8 = vadd.f32 %v1273_v28, %v3038_v26  ;;  %v1259_v2 = vmul.f32 %v1243_v54, %v3052_v48  ;;  %v3066_v56 = vadd.f32 %v1208_v29, %v1111_v44 }
 0x22e   : > { %v2432_v57 = vpop.eup %2431  ;;  %v1306_v58 = vmul.f32 0.7978846, %v1290_v33  ;;  %v1276_v59 = vmul.f32 0.044715, %v1260_v35  ;;  %v1246_v10 = vmul.f32 %v3062_v55, %v3062_v55  ;;  %v1327_v60 = vadd.f32 1.0, %v2426_v40 }
 0x22f   : > { %v2434_v61 = vpop.eup %2433  ;;  %v1305_v62 = vmul.f32 0.7978846, %v1289_v8  ;;  %v1275_v63 = vmul.f32 0.044715, %v1259_v2  ;;  %v1245_v13 = vmul.f32 %v3066_v56, %v3066_v56  ;;  %v1328_v22 = vadd.f32 1.0, %v2424_v30 }
 0x230   : > { %2443 = vtanh.f32 %v1306_v58  ;;  %v1292_v3 = vadd.f32 %v1276_v59, %v3048_v18  ;;  %v1262_v27 = vmul.f32 %v1246_v10, %v3062_v55  ;;  %v1343_v31 = vmul.f32 0.5, %v1327_v60 }
 0x231   : > { %2445 = vtanh.f32 %v1305_v62  ;;  %v1291_v36 = vadd.f32 %v1275_v63, %v3052_v48  ;;  %v1261_v6 = vmul.f32 %v1245_v13, %v3066_v56  ;;  %v1344_v37 = vmul.f32 0.5, %v1328_v22 }
 0x232   : > { %v2436_v38 = vpop.eup %2435  ;;  %v1308_v39 = vmul.f32 0.7978846, %v1292_v3  ;;  %v1278_v40 = vmul.f32 0.044715, %v1262_v27  ;;  %v1359_v41 = vmul.f32 %v1343_v31, %v2975_v19  ;;  %v1329_v46 = vadd.f32 1.0, %v2430_v53 }
 0x233   : > { %v2438_v11 = vpop.eup %2437  ;;  %v1307_v30 = vmul.f32 0.7978846, %v1291_v36  ;;  %v1277_v12 = vmul.f32 0.044715, %v1261_v6  ;;  %v1360_v15 = vmul.f32 %v1344_v37, %v2973_v17  ;;  %v1330_v42 = vadd.f32 1.0, %v2428_v49 }
 0x234   : > { %2447 = vtanh.f32 %v1308_v39  ;;  %v1294_v47 = vadd.f32 %v1278_v40, %v3062_v55  ;;  %v1345_v45 = vmul.f32 0.5, %v1329_v46  ;;  %v1331_v43 = vadd.f32 1.0, %v2434_v61 }
 0x235   : > { %2449 = vtanh.f32 %v1307_v30  ;;  %v1293_v50 = vadd.f32 %v1277_v12, %v3066_v56  ;;  %v2317_v51 = vpack.c.bf16 %v1360_v15, %v1359_v41  ;;  %v1346_v7 = vmul.f32 0.5, %v1330_v42 }
 0x236   : > { %v2440_v52 = vpop.eup %2439  ;;  %v1310_v24 = vmul.f32 0.7978846, %v1294_v47  ;;  %v1361_v19 = vmul.f32 %v1345_v45, %v2985_v34  ;;  %v1332_v53 = vadd.f32 1.0, %v2432_v57  ;;  %v1347_v20 = vmul.f32 0.5, %v1331_v43 }
 0x237   : > { %v2442_v21 = vpop.eup %2441  ;;  %v1309_v28 = vmul.f32 0.7978846, %v1293_v50  ;;  %2318 = vmatpush3.bf16.msra.mxu0 %v2317_v51  ;;  %v1362_v17 = vmul.f32 %v1346_v7, %v2982_v9  ;;  %v1333_v49 = vadd.f32 1.0, %v2438_v11  ;;  %v1334_v54 = vadd.f32 1.0, %v2436_v38 }
 0x238   : > { %2451 = vtanh.f32 %v1310_v24  ;;  %2319 = vmatprep.subr.bf16.mxu0 %v2479_v0  ;;  %v1348_v44 = vmul.f32 0.5, %v1332_v53  ;;  %v1363_v29 = vmul.f32 %v1347_v20, %v2997_v23  ;;  %v1335_v33 = vadd.f32 1.0, %v2442_v21  ;;  %v1389_v21 = vpop.permute.xlu1 %1388 }
 0x239   : > { %2453 = vtanh.f32 %v1309_v28  ;;  %v2320_v35 = vpack.c.bf16 %v1362_v17, %v1361_v19  ;;  %v1349_v8 = vmul.f32 0.5, %v1333_v49  ;;  %v1350_v34 = vmul.f32 0.5, %v1334_v54 }
 0x23a   : > { %v2444_v2 = vpop.eup %2443  ;;  %v1364_v57 = vmul.f32 %v1348_v44, %v2993_v4  ;;  %v1336_v58 = vadd.f32 1.0, %v2440_v52  ;;  %v1351_v59 = vmul.f32 0.5, %v1335_v33  ;;  %v1384_v52 = vpop.permute.xlu0 %1383 }
 0x23b   : > { %v2446_v10 = vpop.eup %2445  ;;  %2321 = vmatpush3.bf16.msra.mxu0 %v2320_v35  ;;  %v1365_v9 = vmul.f32 %v1349_v8, %v3010_v16  ;;  %v1366_v60 = vmul.f32 %v1350_v34, %v3006_v14  ;;  %v1338_v61 = vadd.f32 1.0, %v2444_v2  ;;  %v1616_v2 = vld [vmem:[%s3138_s4] sm:$0x3f] }
 0x23c   : > { %2322 = vmatprep.subr.bf16.mxu0 %v2479_v0  ;;  %v2323_v23 = vpack.c.bf16 %v1364_v57, %v1363_v29  ;;  %v1352_v62 = vmul.f32 0.5, %v1336_v58  ;;  %v1367_v63 = vmul.f32 %v1351_v59, %v3024_v32  ;;  %v1337_v13 = vadd.f32 1.0, %v2446_v10 }
 0x23d   : > { %v2326_v22 = vpack.c.bf16 %v1366_v60, %v1365_v9  ;;  %v1354_v3 = vmul.f32 0.5, %v1338_v61 }
 0x23e   : > { %v2448_v27 = vpop.eup %2447  ;;  %v1368_v4 = vmul.f32 %v1352_v62, %v3020_v25  ;;  %v1353_v31 = vmul.f32 0.5, %v1337_v13  ;;  %v1394_v44 = vpop.permute.xlu0 %1393 }
 0x23f   : > { %v2450_v36 = vpop.eup %2449  ;;  %2324 = vmatpush3.bf16.msra.mxu0 %v2323_v23  ;;  %v1370_v16 = vmul.f32 %v1354_v3, %v3034_v5  ;;  %v1340_v6 = vadd.f32 1.0, %v2448_v27 }
 0x240   : > { %2325 = vmatprep.subr.bf16.mxu0 %v2479_v0  ;;  %v2329_v14 = vpack.c.bf16 %v1368_v4, %v1367_v63  ;;  %v1369_v37 = vmul.f32 %v1353_v31, %v3038_v26  ;;  %v1339_v38 = vadd.f32 1.0, %v2450_v36 }
 0x241   : > { %v1356_v39 = vmul.f32 0.5, %v1340_v6 }
 0x242   : > { %v2452_v32 = vpop.eup %2451  ;;  %v2332_v40 = vpack.c.bf16 %v1370_v16, %v1369_v37  ;;  %v1355_v41 = vmul.f32 0.5, %v1339_v38 }
 0x243   : > { %v2454_v46 = vpop.eup %2453  ;;  %2327 = vmatpush3.bf16.msra.mxu0 %v2326_v22  ;;  %v1372_v25 = vmul.f32 %v1356_v39, %v3048_v18  ;;  %v1342_v11 = vadd.f32 1.0, %v2452_v32  ;;  %v1375_v18 = vld [vmem:[%s3142_s8] sm:$0xff] }
 0x244   : > { %2328 = vmatprep.subr.bf16.mxu0 %v2479_v0  ;;  %v1371_v5 = vmul.f32 %v1355_v41, %v3052_v48  ;;  %v1341_v30 = vadd.f32 1.0, %v2454_v46  ;;  %v1376_v48 = vld [vmem:[%s3142_s8 + $0x8] sm:$0xff] }
 0x245   : > { %v1358_v12 = vmul.f32 0.5, %v1342_v11 }
 0x246   : > { %v2335_v15 = vpack.c.bf16 %v1372_v25, %v1371_v5  ;;  %v1357_v42 = vmul.f32 0.5, %v1341_v30 }
 0x247   : > { %2330 = vmatpush3.bf16.msra.mxu0 %v2329_v14  ;;  %v1374_v26 = vmul.f32 %v1358_v12, %v3062_v55  ;;  %v1377_v55 = vld [vmem:[%s3142_s8 + $0x10] sm:$0xff] }
 0x248   : > { %2331 = vmatprep.subr.bf16.mxu0 %v2479_v0  ;;  %v1373_v47 = vmul.f32 %v1357_v42, %v3066_v56 }
 0x24a   : > { %v2338_v45 = vpack.c.bf16 %v1374_v26, %v1373_v47 }
 0x24b   : > { %2333 = vmatpush3.bf16.msra.mxu0 %v2332_v40 }
 0x24c   : > { %2334 = vmatprep.subr.bf16.mxu0 %v2479_v0 }
 0x24f   : > { %2336 = vmatpush3.bf16.msra.mxu0 %v2335_v15 }
 0x250   : > { %2337 = vmatprep.subr.bf16.mxu0 %v2479_v0 }
 0x253   : > { %2339 = vmatpush3.bf16.msra.mxu0 %v2338_v45 }
 0x254   : > { %2372 = vmatprep.subr.bf16.mxu0 %v2479_v0  ;;  %v1602_v0 = vpop.f32.mrb[16].mxu1 }
 0x255   : > { %v2220_v56 = vpop.f32.mrb[17].mxu1 }
 0x256   : > { %2178 = vmatmul.mubr.f32.vlgmr.msra.gmra.mrb[18].mxu0 %v1375_v18  ;;  %v1607_v43 = vpop.f32.mrb[18].mxu1 }
 0x257   : > { %2180 = vmatprep.mubr.msk.f32.mxu0 %vm2480_vm0, %v2481_v1  ;;  %v2223_v50 = vpop.f32.mrb[19].mxu1 }
 0x258   : > { %v1612_v51 = vpop.f32.mrb[20].mxu1 }
 0x259   : > { %v2226_v7 = vpop.f32.mrb[21].mxu1 }
 0x25a   : > { %2181 = vmatmul.mubr.f32.gmra.mrb[20].mxu0 %v1376_v48 }
 0x25b   : > { %2183 = vmatprep.mubr.msk.f32.mxu0 %vm2480_vm0, %v2481_v1 }
 0x25e   : > { %2184 = vmatmul.mubr.f32.gmra.mrb[22].mxu0 %v1377_v55 }
 0x25f   : > { %2233 = vmatprep.mubr.msk.f32.mxu0 %vm2480_vm0, %v2481_v1 }
 0x329   : > { %v1462_v24 = vpop.f32.mrb[18].mxu0 }
 0x32a   : > { %v1463_v19 = vadd.f32 %v1462_v24, %v1384_v52  ;;  %v2179_v53 = vpop.f32.mrb[19].mxu0 }
 0x32c   : > { %v1617_v20 = vmul.f32 %v1602_v0, %v1463_v19 }
 0x32d   : > { %v1467_v28 = vpop.f32.mrb[20].mxu0 }
 0x32e   : > { %v1468_v17 = vadd.f32 %v1467_v28, %v1389_v21  ;;  %v2182_v49 = vpop.f32.mrb[21].mxu0 }
 0x330   : > { %v1618_v54 = vmul.f32 %v1607_v43, %v1468_v17 }
 0x331   : > { %v1472_v29 = vpop.f32.mrb[22].mxu0 }
 0x332   : > { %v2373_v33 = vpack.c.bf16 %v1618_v54, %v1617_v20  ;;  %v1473_v35 = vadd.f32 %v1472_v29, %v1394_v44  ;;  %v2185_v8 = vpop.f32.mrb[23].mxu0 }
 0x334   : > { %v1619_v34 = vmul.f32 %v1612_v51, %v1473_v35  ;;  %2374 = vmatpush3.bf16.msra.mxu0 %v2373_v33 }
 0x335   : > { %2231 = vmatprep.subr.mxu0 %v2481_v1 }
 0x338   : > { %2232 = vmatpush3.msra.mxu0 %v1619_v34 }
 0x339   : > { %2234 = vmatmul.mubr.msk.f32.vlgmr.msra.gmra.mrb[24].mxu0 %vm1620_vm7, %v1616_v2 }
 0x40c   : > { %v1690_v57 = vpop.f32.mrb[24].mxu0 }
 0x40d   : > { %1694 = vst [vmem:[%s469_s26] sm:$0x3f] %v1690_v57  ;;  %v2235_v58 = vpop.f32.mrb[25].mxu0 }
 0x40e PF: > { %s20_s15 = sadd.s32 1, %s2477_s15   ;;  %s3147_s13 = smov %s2473_s14 }
 0x40f   : > { %p17_p5 = scmp.ge.s32.totalorder %s20_s15, 4   ;;  %s3148_s14 = smov %s3150_s16 }
 0x411   :  { %19 = sbr.rel (!%p17_p5) target bundleno = 2 (0x2), region = 99 }

</bundles_post_ra>
